<compile_context>
chip_gen: v7x
topology: tpu7x:2x2x1
jax: 0.10.0
libtpu: 0.0.40
codegen_flags: <defaults>
</compile_context>

<pallas_src>
import functools
import math

import jax
import jax.numpy as jnp
import numpy as np
from jax.experimental import pallas as pl
from jax.experimental.pallas import tpu as pltpu

_INV_SQRT2 = 0.7071067811865476


def _round_up(x, m):
    return ((x + m - 1) // m) * m


def _gelu_exact(x):
    # PyTorch nn.GELU() default = exact erf-based GELU.
    return 0.5 * x * (1.0 + jax.lax.erf(x * jnp.float32(_INV_SQRT2)))


def time_encoding_kernel(harmonics_dim, t_ref, sel_ref, pe_ref, w1_ref, b1_ref,
                         w2_ref, b2_ref, o_ref):
    # Lane-broadcast the FOLD packed time values with a 0/1 block matrix:
    #   t_wide[r, j*2H + k] = t[r, j]   (exact; every product is x*1 or x*0)
    t_wide = jnp.dot(t_ref[...], sel_ref[...], preferred_element_type=jnp.float32)
    phase = t_wide * pe_ref[...]                       # exact f32 t*pe, matches reference

    # First `harmonics_dim` lanes of each 2H block are sin features, the rest cos features.
    lane = jax.lax.broadcasted_iota(jnp.int32, phase.shape, 1)
    feats = jnp.where(lane % (2 * harmonics_dim) < harmonics_dim,
                      jnp.sin(phase), jnp.cos(phase))

    # Block-diagonal L1 / L2: one lane-dense MXU contraction each.
    h = jnp.dot(feats, w1_ref[...], preferred_element_type=jnp.float32) + b1_ref[...]
    h = _gelu_exact(h)
    y = jnp.dot(h, w2_ref[...], preferred_element_type=jnp.float32) + b2_ref[...]
    o_ref[...] = _gelu_exact(y).astype(o_ref.dtype)


def _block_diag(w, fold):
    if fold == 1:
        return w
    kin, kout = w.shape
    out = jnp.zeros((fold * kin, fold * kout), w.dtype)
    for j in range(fold):
        out = out.at[j * kin:(j + 1) * kin, j * kout:(j + 1) * kout].set(w)
    return out


def pack_params(pe, params, fold):
    """Batch-folded (lane-dense) constants for the kernel.  Build once per parameter set."""
    w1, b1, w2, b2 = params                      # w1: (2H, hidden), b1: (1, hidden), ...
    two_h = 2 * pe.shape[1]
    sel = _block_diag(jnp.ones((1, two_h), jnp.float32), fold)   # (fold, fold*2H) 0/1 blocks
    pe_cat = jnp.concatenate([pe, pe], axis=-1)                  # sin half | cos half phases
    pe_t = jnp.tile(pe_cat, (1, fold))                           # (1, fold*2H)
    w1_bd = _block_diag(w1, fold)                                # (fold*2H, fold*hidden)
    w2_bd = _block_diag(w2, fold)                                # (fold*hidden, fold*dim)
    b1_t = jnp.tile(b1, (1, fold))
    b2_t = jnp.tile(b2, (1, fold))
    return (sel, pe_t, w1_bd, b1_t, w2_bd, b2_t)


def time_encoding_forward(t, pe, params, *, tile_b=4096):
    """t: (B, 1) float32, pe: (1, harmonics_dim). Returns (B, dim)."""
    w1, b1, w2, b2 = params
    B = t.shape[0]
    H = pe.shape[1]
    hidden = w2.shape[0]
    dim = w2.shape[1]

    if B == 0:
        return jnp.zeros((0, dim), jnp.float32)

    # Fold consecutive batch rows onto the lane axis so the output (and every activation)
    # is lane-dense (fold*dim == 128 when dim divides 128); fold=1 degenerates cleanly.
    fold = 128 // dim if (0 < dim <= 128 and 128 % dim == 0) else 1
    align = 8 * fold                               # kernel rows stay a multiple of 8 sublanes

    # Large batch tiles amortize per-grid-step overhead; capping at ceil(B/2) keeps >=2 grid
    # steps when possible so "parallel" can shard the batch across v7x's two TensorCores.
    TB = min(_round_up(tile_b, align), max(align, _round_up(pl.cdiv(B, 2), align)))
    B_pad = _round_up(B, TB)
    if B_pad != B:
        t = jnp.pad(t, ((0, B_pad - B), (0, 0)))
    grid = (B_pad // TB,)
    R = TB // fold                                 # kernel block rows (folded)

    t_fold = t.reshape(B_pad // fold, fold)        # row-major: t_fold[i, j] == t[fold*i + j]
    sel, pe_t, w1_bd, b1_t, w2_bd, b2_t = pack_params(pe, params, fold)

    batch_map = lambda i: (i, 0)                   # activation tiles march over the batch
    const_map = lambda i: (0, 0)                   # weights/biases stay resident in VMEM

    cost = pl.CostEstimate(
        flops=2 * B_pad * fold * (2 * H + 2 * H * hidden + hidden * dim),
        transcendentals=2 * B_pad * 2 * H,         # sin + cos evaluated on every feature lane
        bytes_accessed=4 * (B_pad * (1 + dim)
                            + fold * fold * (2 * H + 2 * H * hidden + hidden * dim)
                            + fold * (2 * H + hidden + dim)),
    )

    out = pl.pallas_call(
        functools.partial(time_encoding_kernel, H),
        out_shape=jax.ShapeDtypeStruct((B_pad // fold, fold * dim), jnp.float32),
        grid=grid,
        in_specs=[
            pl.BlockSpec((R, fold), batch_map),                        # t (batch-folded)
            pl.BlockSpec((fold, fold * 2 * H), const_map),             # 0/1 broadcast matrix
            pl.BlockSpec((1, fold * 2 * H), const_map),                # pe (tiled)
            pl.BlockSpec((fold * 2 * H, fold * hidden), const_map),    # W1 (block-diagonal)
            pl.BlockSpec((1, fold * hidden), const_map),               # b1 (tiled)
            pl.BlockSpec((fold * hidden, fold * dim), const_map),      # W2 (block-diagonal)
            pl.BlockSpec((1, fold * dim), const_map),                  # b2 (tiled)
        ],
        out_specs=pl.BlockSpec((R, fold * dim), batch_map),
        compiler_params=pltpu.CompilerParams(dimension_semantics=("parallel",)),
        cost_estimate=cost,
    )(t_fold, sel, pe_t, w1_bd, b1_t, w2_bd, b2_t)

    out = out.reshape(B_pad, dim)                  # undo the batch fold (metadata-only)
    return out[:B] if B_pad != B else out


def make_pe(harmonics_dim):
    return (jnp.arange(1, harmonics_dim + 1, dtype=jnp.float32)[None, :]
            * jnp.float32(2.0 * math.pi))


def init_params(key, harmonics_dim, hidden_dim, dim):
    """PyTorch nn.Linear default init (U[-1/sqrt(fan_in), +1/sqrt(fan_in)]).

    Weights stored as (in_features, out_features); biases as (1, out_features).
    """
    k_w1, k_b1, k_w2, k_b2 = jax.random.split(key, 4)
    fan1 = 2 * harmonics_dim
    bound1 = 1.0 / np.sqrt(fan1)
    w1 = jax.random.uniform(k_w1, (fan1, hidden_dim), jnp.float32, -bound1, bound1)
    b1 = jax.random.uniform(k_b1, (1, hidden_dim), jnp.float32, -bound1, bound1)
    bound2 = 1.0 / np.sqrt(hidden_dim)
    w2 = jax.random.uniform(k_w2, (hidden_dim, dim), jnp.float32, -bound2, bound2)
    b2 = jax.random.uniform(k_b2, (1, dim), jnp.float32, -bound2, bound2)
    return (w1, b1, w2, b2)


def reference_forward(t, pe, params):
    w1, b1, w2, b2 = params
    t_emb = jnp.concatenate([jnp.sin(t * pe), jnp.cos(t * pe)], axis=-1)
    h = jax.nn.gelu(t_emb @ w1 + b1, approximate=False)
    return jax.nn.gelu(h @ w2 + b2, approximate=False)


if __name__ == "__main__":
    harmonics_dim, hidden_dim, dim = 16, 64, 32

    key = jax.random.PRNGKey(0)
    k_t, k_p, k_t2, k_t3 = jax.random.split(key, 4)
    params = init_params(k_p, harmonics_dim, hidden_dim, dim)
    pe = make_pe(harmonics_dim)

    def check(tt):
        out = jax.block_until_ready(time_encoding_forward(tt, pe, params))
        ref = reference_forward(tt, pe, params)
        # atol 2e-5: small insurance for MXU accumulation-order / multi-pass f32 rounding.
        np.testing.assert_allclose(np.asarray(out), np.asarray(ref), rtol=1e-5, atol=2e-5)

    check(jax.random.uniform(k_t, (8, 1), jnp.float32))     # multiple of the fold/sublane tile
    check(jax.random.uniform(k_t2, (5, 1), jnp.float32))    # ragged batch (padding path)
    check(jax.random.uniform(k_t3, (200, 1), jnp.float32))  # >=2 grid steps (v7x both-TC path)

    print("KERNEL_OK")
</pallas_src>

<mosaic_0001>
module attributes {stable_mosaic.version = 11 : i64} {
  func.func @time_encoding_kernel(%arg0: i32, %arg1: memref<8x4xf32, #tpu.memory_space<vmem>>, %arg2: memref<4x128xf32, #tpu.memory_space<vmem>>, %arg3: memref<1x128xf32, #tpu.memory_space<vmem>>, %arg4: memref<128x256xf32, #tpu.memory_space<vmem>>, %arg5: memref<1x256xf32, #tpu.memory_space<vmem>>, %arg6: memref<256x128xf32, #tpu.memory_space<vmem>>, %arg7: memref<1x128xf32, #tpu.memory_space<vmem>>, %arg8: memref<8x128xf32, #tpu.memory_space<vmem>>) attributes {dimension_semantics = [#tpu.dimension_semantics<parallel>], iteration_bounds = array<i64: 1>, scalar_prefetch = 0 : i64, scratch_operands = 0 : i64, tpu.core_type = #tpu.core_type<tc>, window_params = [{transform_indices = @transform_0, window_bounds = array<i64: 8, 4>}, {pipeline_mode = #tpu.pipeline_mode<synchronous>, transform_indices = @transform_1, window_bounds = array<i64: 4, 128>}, {pipeline_mode = #tpu.pipeline_mode<synchronous>, transform_indices = @transform_2, window_bounds = array<i64: 1, 128>}, {pipeline_mode = #tpu.pipeline_mode<synchronous>, transform_indices = @transform_3, window_bounds = array<i64: 128, 256>}, {pipeline_mode = #tpu.pipeline_mode<synchronous>, transform_indices = @transform_4, window_bounds = array<i64: 1, 256>}, {pipeline_mode = #tpu.pipeline_mode<synchronous>, transform_indices = @transform_5, window_bounds = array<i64: 256, 128>}, {pipeline_mode = #tpu.pipeline_mode<synchronous>, transform_indices = @transform_6, window_bounds = array<i64: 1, 128>}, {transform_indices = @transform_7, window_bounds = array<i64: 8, 128>}]} {
    %c0 = arith.constant 0 : index
    %c0_0 = arith.constant 0 : index
    %0 = vector.load %arg1[%c0, %c0_0] : memref<8x4xf32, #tpu.memory_space<vmem>>, vector<8x4xf32>
    %c0_1 = arith.constant 0 : index
    %c0_2 = arith.constant 0 : index
    %1 = vector.load %arg2[%c0_1, %c0_2] : memref<4x128xf32, #tpu.memory_space<vmem>>, vector<4x128xf32>
    %cst = arith.constant dense<0.000000e+00> : vector<8x128xf32>
    %2 = tpu.matmul %0, %1, %cst {dimension_numbers = #tpu.dot_dimension_numbers<[1], [0], [0], [1], [0, 0, 1, 1], [], []>} : vector<8x4xf32>, vector<4x128xf32>, vector<8x128xf32> -> vector<8x128xf32>
    %c0_3 = arith.constant 0 : index
    %c0_4 = arith.constant 0 : index
    %3 = vector.load %arg3[%c0_3, %c0_4] : memref<1x128xf32, #tpu.memory_space<vmem>>, vector<1x128xf32>
    %4 = vector.broadcast %3 : vector<1x128xf32> to vector<8x128xf32>
    %5 = arith.mulf %2, %4 : vector<8x128xf32>
    %6 = tpu.iota {dimensions = array<i32: 1>} : vector<8x128xi32>
    %c32_i32 = arith.constant 32 : i32
    %c0_i32 = arith.constant 0 : i32
    %7 = arith.cmpi eq, %c32_i32, %c0_i32 : i32
    %c1_i32 = arith.constant 1 : i32
    %8 = arith.select %7, %c1_i32, %c32_i32 : i32
    %9 = vector.broadcast %8 : i32 to vector<8x128xi32>
    %10 = arith.remsi %6, %9 : vector<8x128xi32>
    %c0_i32_5 = arith.constant 0 : i32
    %11 = vector.broadcast %c0_i32_5 : i32 to vector<8x128xi32>
    %12 = arith.cmpi ne, %10, %11 : vector<8x128xi32>
    %c0_i32_6 = arith.constant 0 : i32
    %13 = vector.broadcast %c0_i32_6 : i32 to vector<8x128xi32>
    %14 = arith.cmpi slt, %10, %13 : vector<8x128xi32>
    %c0_i32_7 = arith.constant 0 : i32
    %15 = arith.cmpi slt, %8, %c0_i32_7 : i32
    %16 = vector.broadcast %15 : i1 to vector<8x128xi1>
    %17 = vector.broadcast %16 : vector<8x128xi1> to vector<8x128xi1>
    %18 = arith.xori %14, %17 : vector<8x128xi1>
    %19 = arith.andi %18, %12 : vector<8x128xi1>
    %20 = vector.broadcast %8 : i32 to vector<8x128xi32>
    %21 = arith.addi %10, %20 : vector<8x128xi32>
    %22 = arith.select %19, %21, %10 : vector<8x128xi1>, vector<8x128xi32>
    %c16_i32 = arith.constant 16 : i32
    %23 = vector.broadcast %c16_i32 : i32 to vector<8x128xi32>
    %24 = arith.cmpi slt, %22, %23 : vector<8x128xi32>
    %25 = math.sin %5 : vector<8x128xf32>
    %26 = math.cos %5 : vector<8x128xf32>
    %27 = arith.select %24, %25, %26 : vector<8x128xi1>, vector<8x128xf32>
    %c0_8 = arith.constant 0 : index
    %c0_9 = arith.constant 0 : index
    %28 = vector.load %arg4[%c0_8, %c0_9] : memref<128x256xf32, #tpu.memory_space<vmem>>, vector<128x256xf32>
    %cst_10 = arith.constant dense<0.000000e+00> : vector<8x256xf32>
    %29 = tpu.matmul %27, %28, %cst_10 {dimension_numbers = #tpu.dot_dimension_numbers<[1], [0], [0], [1], [0, 0, 1, 1], [], []>} : vector<8x128xf32>, vector<128x256xf32>, vector<8x256xf32> -> vector<8x256xf32>
    %c0_11 = arith.constant 0 : index
    %c0_12 = arith.constant 0 : index
    %30 = vector.load %arg5[%c0_11, %c0_12] : memref<1x256xf32, #tpu.memory_space<vmem>>, vector<1x256xf32>
    %31 = vector.broadcast %30 : vector<1x256xf32> to vector<8x256xf32>
    %32 = arith.addf %29, %31 : vector<8x256xf32>
    %cst_13 = arith.constant 5.000000e-01 : f32
    %33 = vector.broadcast %cst_13 : f32 to vector<8x256xf32>
    %34 = arith.mulf %33, %32 : vector<8x256xf32>
    %cst_14 = arith.constant 0.707106769 : f32
    %35 = vector.broadcast %cst_14 : f32 to vector<8x256xf32>
    %36 = arith.mulf %32, %35 : vector<8x256xf32>
    %37 = math.erf %36 : vector<8x256xf32>
    %cst_15 = arith.constant 1.000000e+00 : f32
    %38 = vector.broadcast %cst_15 : f32 to vector<8x256xf32>
    %39 = arith.addf %38, %37 : vector<8x256xf32>
    %40 = arith.mulf %34, %39 : vector<8x256xf32>
    %c0_16 = arith.constant 0 : index
    %c0_17 = arith.constant 0 : index
    %41 = vector.load %arg6[%c0_16, %c0_17] : memref<256x128xf32, #tpu.memory_space<vmem>>, vector<256x128xf32>
    %cst_18 = arith.constant dense<0.000000e+00> : vector<8x128xf32>
    %42 = tpu.matmul %40, %41, %cst_18 {dimension_numbers = #tpu.dot_dimension_numbers<[1], [0], [0], [1], [0, 0, 1, 1], [], []>} : vector<8x256xf32>, vector<256x128xf32>, vector<8x128xf32> -> vector<8x128xf32>
    %c0_19 = arith.constant 0 : index
    %c0_20 = arith.constant 0 : index
    %43 = vector.load %arg7[%c0_19, %c0_20] : memref<1x128xf32, #tpu.memory_space<vmem>>, vector<1x128xf32>
    %44 = vector.broadcast %43 : vector<1x128xf32> to vector<8x128xf32>
    %45 = arith.addf %42, %44 : vector<8x128xf32>
    %cst_21 = arith.constant 5.000000e-01 : f32
    %46 = vector.broadcast %cst_21 : f32 to vector<8x128xf32>
    %47 = arith.mulf %46, %45 : vector<8x128xf32>
    %cst_22 = arith.constant 0.707106769 : f32
    %48 = vector.broadcast %cst_22 : f32 to vector<8x128xf32>
    %49 = arith.mulf %45, %48 : vector<8x128xf32>
    %50 = math.erf %49 : vector<8x128xf32>
    %cst_23 = arith.constant 1.000000e+00 : f32
    %51 = vector.broadcast %cst_23 : f32 to vector<8x128xf32>
    %52 = arith.addf %51, %50 : vector<8x128xf32>
    %53 = arith.mulf %47, %52 : vector<8x128xf32>
    %c0_24 = arith.constant 0 : index
    %c0_25 = arith.constant 0 : index
    %54 = vector.load %arg8[%c0_24, %c0_25] : memref<8x128xf32, #tpu.memory_space<vmem>>, vector<8x128xf32>
    tpu.vector_store %arg8[%c0_24, %c0_25], %53 {strides = array<i32>} : memref<8x128xf32, #tpu.memory_space<vmem>>, vector<8x128xf32>,
    return
  }
  func.func @transform_0(%arg0: i32) -> (i32, i32) {
    %c0_i32 = arith.constant 0 : i32
    %c0_i32_0 = arith.constant 0 : i32
    return %arg0, %c0_i32 : i32, i32
  }
  func.func @transform_1(%arg0: i32) -> (i32, i32) {
    %c0_i32 = arith.constant 0 : i32
    %c0_i32_0 = arith.constant 0 : i32
    %c0_i32_1 = arith.constant 0 : i32
    return %c0_i32, %c0_i32_0 : i32, i32
  }
  func.func @transform_2(%arg0: i32) -> (i32, i32) {
    %c0_i32 = arith.constant 0 : i32
    %c0_i32_0 = arith.constant 0 : i32
    %c0_i32_1 = arith.constant 0 : i32
    return %c0_i32, %c0_i32_0 : i32, i32
  }
  func.func @transform_3(%arg0: i32) -> (i32, i32) {
    %c0_i32 = arith.constant 0 : i32
    %c0_i32_0 = arith.constant 0 : i32
    %c0_i32_1 = arith.constant 0 : i32
    return %c0_i32, %c0_i32_0 : i32, i32
  }
  func.func @transform_4(%arg0: i32) -> (i32, i32) {
    %c0_i32 = arith.constant 0 : i32
    %c0_i32_0 = arith.constant 0 : i32
    %c0_i32_1 = arith.constant 0 : i32
    return %c0_i32, %c0_i32_0 : i32, i32
  }
  func.func @transform_5(%arg0: i32) -> (i32, i32) {
    %c0_i32 = arith.constant 0 : i32
    %c0_i32_0 = arith.constant 0 : i32
    %c0_i32_1 = arith.constant 0 : i32
    return %c0_i32, %c0_i32_0 : i32, i32
  }
  func.func @transform_6(%arg0: i32) -> (i32, i32) {
    %c0_i32 = arith.constant 0 : i32
    %c0_i32_0 = arith.constant 0 : i32
    %c0_i32_1 = arith.constant 0 : i32
    return %c0_i32, %c0_i32_0 : i32, i32
  }
  func.func @transform_7(%arg0: i32) -> (i32, i32) {
    %c0_i32 = arith.constant 0 : i32
    %c0_i32_0 = arith.constant 0 : i32
    return %arg0, %c0_i32 : i32, i32
  }
}

</mosaic_0001>

<bundles_post_ra>
// kernel: tpu_custom_call.1
= control target key start
LH: loop header
LB: loop body
LE: loop exit
PB: predicated region body
PF: predicated region fallthrough
CT: control target
= control target key end

     0   :  { %12 = vsyncpa [#allocation3], 0  ;;  %s976_s0 = inlined_call_operand.vmem [shape: f32[8,4], index: 0, kind: input, shape index: {}]   ;;  %s977_s1 = inlined_call_operand.vmem [shape: f32[4,128], index: 1, kind: input, shape index: {}]   ;;  %s978_s2 = inlined_call_operand.vmem [shape: f32[1,128], index: 2, kind: input, shape index: {}]   ;;  %s979_s3 = inlined_call_operand.hbm [shape: f32[128,256], index: 3, kind: input, shape index: {}]   ;;  %s980_s4 = inlined_call_operand.vmem [shape: f32[1,256], index: 4, kind: input, shape index: {}]   ;;  %s981_s5 = inlined_call_operand.hbm [shape: f32[256,128], index: 5, kind: input, shape index: {}]   ;;  %s982_s6 = inlined_call_operand.vmem [shape: f32[1,128], index: 6, kind: input, shape index: {}]   ;;  %s983_s7 = inlined_call_operand.hbm [shape: f32[8,128], index: 7, kind: output, shape index: {}]  }
   0x1   :  { %13 = vsyncpa [#allocation6], 0 }
   0x2   :  { %14 = vsyncpa [#allocation4], 0  ;;  %s841_s24 = smov [#allocation2]   ;;  %s769_s28 = scalar_lea.hbm %s979_s3, 4096 }
   0x3   :  { %s26_s25 = sshll.u32 %s841_s24, 4  ;;  %p770_p0 = scmp.ne.s32.totalorder %s979_s3, %s769_s28  ;;  %s27_s25 = int_to_ptr.vmem [resolvable:$true] %s26_s25 }
   0x4   :  { %p773_p1 = scmp.lt.u32.totalorder %s769_s28, %s979_s3 }
   0x6   :  { %p775_p2 = pnand %p773_p1, %p770_p0 }
   0x8   :  { %778 = shalt.err (!%p775_p2)
}
   0x9   :  { %s779_s10 = scalar_lea.vmem %s27_s25, 4096  ;;  %p784_p4 = scmp.lt.s32.totalorder %s27_s25, %s27_s25 }
   0xa   :  { %p780_p3 = scmp.ne.s32.totalorder %s27_s25, %s779_s10  ;;  %p785_p5 = scmp.lt.s32.totalorder %s779_s10, %s779_s10 }
   0xc   :  { %p786_p6 = por %p785_p5, %p784_p4 }
   0xe   :  { %p787_p7 = pnand %p786_p6, %p780_p3 }
  0x10   :  { %790 = shalt.err (!%p787_p7)
}
  0x11   :  { %s842_s11 = smov 256   ;;  %s843_s12 = smov 16  }
  0x12   :  { %32 = dma.hbm_to_vmem [thread:$0]  %s979_s3, 4096, %s27_s25, [#allocation3], %s842_s11, %s842_s11, %s843_s12  }
  0x13   :  { %s844_s15 = smov [#allocation5]   ;;  %s791_s19 = scalar_lea.hbm %s981_s5, 4096 }
  0x14   :  { %s40_s16 = sshll.u32 %s844_s15, 4  ;;  %p792_p8 = scmp.ne.s32.totalorder %s981_s5, %s791_s19  ;;  %s41_s16 = int_to_ptr.vmem [resolvable:$true] %s40_s16 }
  0x15   :  { %p795_p9 = scmp.lt.u32.totalorder %s791_s19, %s981_s5 }
  0x17   :  { %p797_p10 = pnand %p795_p9, %p792_p8 }
  0x19   :  { %800 = shalt.err (!%p797_p10)
}
  0x1a   :  { %s801_s24 = scalar_lea.vmem %s41_s16, 4096  ;;  %p806_p12 = scmp.lt.s32.totalorder %s41_s16, %s41_s16 }
  0x1b   :  { %p802_p11 = scmp.ne.s32.totalorder %s41_s16, %s801_s24  ;;  %p807_p13 = scmp.lt.s32.totalorder %s801_s24, %s801_s24 }
  0x1d   :  { %p808_p0 = por %p807_p13, %p806_p12 }
  0x1f   :  { %p809_p1 = pnand %p808_p0, %p802_p11 }
  0x21   :  { %812 = shalt.err (!%p809_p1)
}
  0x22   :  { %s845_s3 = smov 128   ;;  %s846_s25 = smov 8  }
  0x23   :  { %46 = dma.hbm_to_vmem [thread:$0]  %s981_s5, 4096, %s41_s16, [#allocation6], %s845_s3, %s845_s3, %s846_s25  }
  0x24   :  { %835 = dma.done.wait [#allocation3], 4096  }
  0x25   :  { %836 = vsyncadd [#allocation3], 4294963200 }
  0x26   :  { %837 = dma.done.wait [#allocation6], 4096  }
  0x27   :  { %838 = vsyncadd [#allocation6], 4294963200  ;;  %v847_v0 = vmov 0.0   ;;  %vm848_vm0 = vmmov 0   ;;  %vm61_vm1 = vcmask 1043456   ;;  %vm57_vm2 = vcmask 31744  }
  0x28   :  { %671 = vmatprep.subr.mxu0 %v847_v0  ;;  %673 = vmatprep.mubr.msk.f32.mxu0 %vm848_vm0, %v847_v0  ;;  %v56_v1 = vld [vmem:[%s977_s1] sm:$0xf]  ;;  %v367_v3 = vld [vmem:[#allocation2 + $0x8] sm:$0xff]  ;;  %v369_v4 = vld [vmem:[#allocation2 + $0x18] sm:$0xff]  ;;  %s855_s10 = smov [#allocation7]  }
  0x29   :  { %474 = vmatprep.mubr.f32.mxu1 %v847_v0  ;;  %v55_v2 = vld [vmem:[%s976_s0] sm:$0xff]  ;;  %672 = vmatpush3.msk.msra.mxu0 %vm61_vm1, %v56_v1  ;;  %v676_v5 = vpack.c.bf16 %v369_v4, %v367_v3  ;;  %v368_v7 = vld [vmem:[#allocation2 + $0x10] sm:$0xff]  ;;  %v371_v9 = vld [vmem:[#allocation2 + $0x28] sm:$0xff]  ;;  %s612_s11 = sshll.u32 %s855_s10, 4  ;;  %s613_s11 = int_to_ptr.vmem [resolvable:$true] %s612_s11 }
  0x2a   :  { %674 = vmatmul.mubr.msk.f32.vlgmr.msra.gmra.mrb[0].mxu0 %vm57_vm2, %v55_v2  ;;  %v366_v6 = vld [vmem:[#allocation2] sm:$0xff]  ;;  %v373_v10 = vld [vmem:[#allocation2 + $0x38] sm:$0xff]  ;;  %v372_v13 = vld [vmem:[#allocation2 + $0x30] sm:$0xff]  ;;  %s813_s12 = scalar_lea.vmem %s613_s11, 128  ;;  %p818_p3 = scmp.lt.s32.totalorder %s613_s11, %s613_s11 }
  0x2b   :  { %v678_v8 = vpack.c.bf16 %v368_v7, %v366_v6  ;;  %677 = vmatprep.subr.bf16.mxu1 %v676_v5  ;;  %v680_v11 = vpack.c.bf16 %v373_v10, %v371_v9  ;;  %v370_v12 = vld [vmem:[#allocation2 + $0x20] sm:$0xff]  ;;  %v375_v15 = vld [vmem:[#allocation2 + $0x48] sm:$0xff]  ;;  %v377_v16 = vld [vmem:[#allocation2 + $0x58] sm:$0xff]  ;;  %p814_p2 = scmp.ne.s32.totalorder %s613_s11, %s813_s12  ;;  %p819_p4 = scmp.lt.s32.totalorder %s813_s12, %s813_s12 }
  0x2c   :  { %v682_v14 = vpack.c.bf16 %v372_v13, %v370_v12  ;;  %v684_v17 = vpack.c.bf16 %v377_v16, %v375_v15  ;;  %v374_v18 = vld [vmem:[#allocation2 + $0x40] sm:$0xff]  ;;  %v376_v19 = vld [vmem:[#allocation2 + $0x50] sm:$0xff]  ;;  %v379_v21 = vld [vmem:[#allocation2 + $0x68] sm:$0xff] }
  0x2d   :  { %679 = vmatpush1.bf16.msra.mxu1 %v678_v8  ;;  %v686_v20 = vpack.c.bf16 %v376_v19, %v374_v18  ;;  %v381_v22 = vld [vmem:[#allocation2 + $0x78] sm:$0xff]  ;;  %v378_v24 = vld [vmem:[#allocation2 + $0x60] sm:$0xff]  ;;  %v380_v25 = vld [vmem:[#allocation2 + $0x70] sm:$0xff]  ;;  %v849_v19 = vmov 683565275   ;;  %p820_p5 = por %p819_p4, %p818_p3 }
  0x2e   :  { %681 = vmatprep.subr.bf16.mxu1 %v680_v11  ;;  %v688_v23 = vpack.c.bf16 %v381_v22, %v379_v21  ;;  %v690_v26 = vpack.c.bf16 %v380_v25, %v378_v24  ;;  %v383_v27 = vld [vmem:[#allocation2 + $0x88] sm:$0xff]  ;;  %v385_v28 = vld [vmem:[#allocation2 + $0x98] sm:$0xff]  ;;  %v382_v30 = vld [vmem:[#allocation2 + $0x80] sm:$0xff]  ;;  %v850_v21 = vmov 2475754826  }
  0x2f   :  { %v692_v29 = vpack.c.bf16 %v385_v28, %v383_v27  ;;  %v384_v31 = vld [vmem:[#allocation2 + $0x90] sm:$0xff]  ;;  %v387_v32 = vld [vmem:[#allocation2 + $0xa8] sm:$0xff]  ;;  %v389_v34 = vld [vmem:[#allocation2 + $0xb8] sm:$0xff]  ;;  %v851_v24 = vmov 2131351028   ;;  %p821_p6 = pnand %p820_p5, %p814_p2 }
  0x30   :  { %v694_v33 = vpack.c.bf16 %v384_v31, %v382_v30  ;;  %v386_v35 = vld [vmem:[#allocation2 + $0xa0] sm:$0xff]  ;;  %v388_v36 = vld [vmem:[#allocation2 + $0xb0] sm:$0xff]  ;;  %v696_v37 = vpack.c.bf16 %v389_v34, %v387_v32  ;;  %v391_v38 = vld [vmem:[#allocation2 + $0xc8] sm:$0xff]  ;;  %v852_v27 = vmov 2102212464  }
  0x31   :  { %683 = vmatpush1.bf16.msra.mxu1 %v682_v14  ;;  %v393_v39 = vld [vmem:[#allocation2 + $0xd8] sm:$0xff]  ;;  %v698_v40 = vpack.c.bf16 %v388_v36, %v386_v35  ;;  %v390_v42 = vld [vmem:[#allocation2 + $0xc0] sm:$0xff]  ;;  %v392_v43 = vld [vmem:[#allocation2 + $0xd0] sm:$0xff]  ;;  %v853_v30 = vmov 920167782  }
  0x32   :  { %685 = vmatprep.subr.bf16.mxu1 %v684_v17  ;;  %v700_v41 = vpack.c.bf16 %v393_v39, %v391_v38  ;;  %v395_v44 = vld [vmem:[#allocation2 + $0xe8] sm:$0xff]  ;;  %v397_v45 = vld [vmem:[#allocation2 + $0xf8] sm:$0xff]  ;;  %v702_v46 = vpack.c.bf16 %v392_v43, %v390_v42  ;;  %v394_v48 = vld [vmem:[#allocation2 + $0xe0] sm:$0xff] }
  0x33   :  { %v704_v47 = vpack.c.bf16 %v397_v45, %v395_v44  ;;  %v396_v49 = vld [vmem:[#allocation2 + $0xf0] sm:$0xff]  ;;  %v507_v51 = vld [vmem:[#allocation5 + $0x80] sm:$0xff]  ;;  %v508_v52 = vld [vmem:[#allocation5 + $0x88] sm:$0xff] }
  0x34   :  { %v706_v50 = vpack.c.bf16 %v396_v49, %v394_v48  ;;  %v491_v53 = vld [vmem:[#allocation5] sm:$0xff]  ;;  %v708_v54 = vpack.c.bf16 %v508_v52, %v507_v51  ;;  %v492_v55 = vld [vmem:[#allocation5 + $0x8] sm:$0xff]  ;;  %v509_v56 = vld [vmem:[#allocation5 + $0x90] sm:$0xff] }
  0x35   :  { %687 = vmatpush1.bf16.msra.mxu1 %v686_v20  ;;  %v510_v57 = vld [vmem:[#allocation5 + $0x98] sm:$0xff]  ;;  %v710_v58 = vpack.c.bf16 %v492_v55, %v491_v53  ;;  %v493_v60 = vld [vmem:[#allocation5 + $0x10] sm:$0xff]  ;;  %v511_v62 = vld [vmem:[#allocation5 + $0xa0] sm:$0xff] }
  0x36   :  { %689 = vmatprep.subr.bf16.mxu1 %v688_v23  ;;  %v712_v59 = vpack.c.bf16 %v510_v57, %v509_v56  ;;  %v494_v61 = vld [vmem:[#allocation5 + $0x18] sm:$0xff]  ;;  %709 = vmatprep.subr.bf16.mxu0 %v708_v54  ;;  %v512_v63 = vld [vmem:[#allocation5 + $0xa8] sm:$0xff]  ;;  %v495_v2 = vld [vmem:[#allocation5 + $0x20] sm:$0xff] }
  0x37   :  { %711 = vmatpush3.bf16.msra.mxu0 %v710_v58  ;;  %v714_v0 = vpack.c.bf16 %v494_v61, %v493_v60  ;;  %v716_v1 = vpack.c.bf16 %v512_v63, %v511_v62  ;;  %v496_v3 = vld [vmem:[#allocation5 + $0x28] sm:$0xff]  ;;  %v624_v5 = vld [vmem:[%s978_s2] ss:$0 sm:$0xff] }
  0x38   :  { %713 = vmatprep.subr.bf16.mxu0 %v712_v59  ;;  %v718_v4 = vpack.c.bf16 %v496_v3, %v495_v2 }
  0x39   :  { %691 = vmatpush1.bf16.msra.mxu1 %v690_v26 }
  0x3a   :  { %693 = vmatprep.subr.bf16.mxu1 %v692_v29 }
  0x3b   :  { %715 = vmatpush3.bf16.msra.mxu0 %v714_v0 }
  0x3c   :  { %717 = vmatprep.subr.bf16.mxu0 %v716_v1 }
  0x3d   :  { %695 = vmatpush1.bf16.msra.mxu1 %v694_v33  ;;  %v854_v33 = vmov 1326507024  }
  0x3e   :  { %697 = vmatprep.subr.bf16.mxu1 %v696_v37 }
  0x3f   :  { %719 = vmatpush3.bf16.msra.mxu0 %v718_v4 }
  0x41   :  { %699 = vmatpush1.bf16.msra.mxu1 %v698_v40 }
  0x42   :  { %701 = vmatprep.subr.bf16.mxu1 %v700_v41 }
  0x45   :  { %703 = vmatpush1.bf16.msra.mxu1 %v702_v46 }
  0x46   :  { %705 = vmatprep.subr.bf16.mxu1 %v704_v47 }
  0x49   :  { %707 = vmatpush1.bf16.msra.mxu1 %v706_v50 }
  0xfd   :  { %v131_v6 = vpop.f32.mrb[0].mxu0 }
  0xfe   :  { %v929_v7 = vmul.f32 %v624_v5, %v131_v6  ;;  %v675_v8 = vpop.f32.mrb[1].mxu0 }
 0x100   :  { %v161_v9 = vand.u32 2139095040, %v929_v7  ;;  %v158_v13 = vand.u32 2147483647, %v929_v7  ;;  %vm160_vm10 = vcmp.lt.s32.totalorder %v929_v7, 0 }
 0x102   :  { %v162_v10 = vshrl.u32 %v161_v9, 23  ;;  %v165_v16 = vand.u32 8388607, %v158_v13  ;;  %vm159_vm11 = vcmp.le.f32.partialorder %v158_v13, 0.7853982 }
 0x104   :  { %v625_v11 = vadd.s32 4294967169, %v162_v10  ;;  %v166_v35 = vor.u32 8388608, %v165_v16 }
 0x106   :  { %v168_v12 = vadd.s32 1, %v625_v11  ;;  %v206_v49 = vshll.u32 %v166_v35, 8 }
 0x108   :  { %vm169_vm3 = vcmp.gt.s32.totalorder %v168_v12, 0 }
 0x109   :  { %v170_v14 = vsel %vm169_vm3, %v168_v12, 0  ;;  %vm250_vm3 = vweird.f32 %v929_v7 }
 0x10a   :  { %v172_v15 = vand.u32 31, %v170_v14  ;;  %v171_v18 = vshrl.u32 %v170_v14, 5 }
 0x10c   :  { %v173_v17 = vsub.s32 32, %v172_v15  ;;  %v175_v20 = vshll.u32 %v849_v19, %v172_v15  ;;  %v178_v22 = vshll.u32 %v850_v21, %v172_v15  ;;  %v181_v26 = vshll.u32 %v851_v24, %v172_v15 }
 0x10d   :  { %v184_v29 = vshll.u32 %v852_v27, %v172_v15  ;;  %v187_v32 = vshll.u32 %v853_v30, %v172_v15  ;;  %vm190_vm4 = vcmp.lt.s32.totalorder %v171_v18, 1  ;;  %vm193_vm5 = vcmp.lt.s32.totalorder %v171_v18, 4 }
 0x10e   :  { %v176_v23 = vshrl.u32 %v850_v21, %v173_v17  ;;  %v179_v25 = vshrl.u32 %v851_v24, %v173_v17  ;;  %v182_v28 = vshrl.u32 %v852_v27, %v173_v17  ;;  %v185_v31 = vshrl.u32 %v853_v30, %v173_v17 }
 0x10f   :  { %v188_v34 = vshrl.u32 %v854_v33, %v173_v17  ;;  %v174_v44 = vshrl.u32 %v849_v19, %v173_v17  ;;  %vm192_vm6 = vcmp.lt.s32.totalorder %v171_v18, 3  ;;  %vm191_vm7 = vcmp.lt.s32.totalorder %v171_v18, 2 }
 0x110   :  { %v177_v36 = vor.u32 %v176_v23, %v175_v20  ;;  %v180_v37 = vor.u32 %v179_v25, %v178_v22  ;;  %v183_v38 = vor.u32 %v182_v28, %v181_v26  ;;  %v186_v39 = vor.u32 %v185_v31, %v184_v29 }
 0x111   :  { %v189_v40 = vor.u32 %v188_v34, %v187_v32  ;;  %v143_v27 = vlaneseq }
 0x112   :  { %v195_v41 = vsel %vm193_vm5, %v183_v38, 2102212464  ;;  %v198_v42 = vsel %vm190_vm4, %v177_v36, %v180_v37  ;;  %v202_v43 = vsel %vm190_vm4, %v180_v37, %v183_v38  ;;  %v199_v45 = vsel %vm193_vm5, %v186_v39, 920167782 }
 0x113   :  { %v203_v46 = vsel %vm193_vm5, %v189_v40, 1326507024  ;;  %v200_v47 = vsel %vm192_vm6, %v183_v38, %v199_v45  ;;  %v194_v50 = vsel %vm190_vm4, %v174_v44, %v177_v36  ;;  %v196_v51 = vsel %vm192_vm6, %v180_v37, %v195_v41 }
 0x114   :  { %v204_v48 = vsel %vm192_vm6, %v186_v39, %v203_v46  ;;  %v201_v52 = vsel %vm191_vm7, %v198_v42, %v200_v47  ;;  %v197_v58 = vsel %vm191_vm7, %v194_v50, %v196_v51  ;;  %v144_v29 = vand.u32 127, %v143_v27  ;;  %v513_v47 = vld [vmem:[#allocation5 + $0xb0] sm:$0xff]  ;;  %v498_v51 = vld [vmem:[#allocation5 + $0x38] sm:$0xff] }
 0x115   :  { %v205_v53 = vsel %vm191_vm7, %v202_v43, %v204_v48  ;;  %v938_v56 = vmul.u32.u64.low %v206_v49, %v201_v52  ;;  %v939_v57 = vmul.u32.u64.high %v206_v49, %v201_v52, %v938_v56  ;;  %v213_v60 = vmul.u32 %v206_v49, %v197_v58  ;;  %v514_v48 = vld [vmem:[#allocation5 + $0xb8] sm:$0xff]  ;;  %v497_v50 = vld [vmem:[#allocation5 + $0x30] sm:$0xff] }
 0x116   :  { %v935_v54 = vmul.u32.u64.low %v206_v49, %v205_v53  ;;  %v936_v55 = vmul.u32.u64.high %v206_v49, %v205_v53, %v935_v54  ;;  %v149_v31 = vand.u32 31, %v144_v29  ;;  %v720_v49 = vpack.c.bf16 %v514_v48, %v513_v47  ;;  %v515_v53 = vld [vmem:[#allocation5 + $0xc0] sm:$0xff]  ;;  %v517_v58 = vld [vmem:[#allocation5 + $0xd0] sm:$0xff] }
 0x117   :  { %v216_v59 = vadd.s32 1, %v939_v57  ;;  %v722_v52 = vpack.c.bf16 %v498_v51, %v497_v50  ;;  %v516_v54 = vld [vmem:[#allocation5 + $0xc8] sm:$0xff] }
 0x118   :  { %vm215_vm8 = vc.u32 %v936_v55, %v938_v56  ;;  %v214_v9 = vadd.s32 %v938_v56, %v936_v55  ;;  %vm950_vm12 = vcmp.lt.s32.totalorder %v149_v31, 16  ;;  %721 = vmatprep.subr.bf16.mxu0 %v720_v49  ;;  %v724_v55 = vpack.c.bf16 %v516_v54, %v515_v53  ;;  %v500_v56 = vld [vmem:[#allocation5 + $0x48] sm:$0xff] }
 0x119   :  { %v217_v61 = vsel %vm215_vm8, %v216_v59, %v939_v57  ;;  %723 = vmatpush3.bf16.msra.mxu0 %v722_v52  ;;  %v518_v59 = vld [vmem:[#allocation5 + $0xd8] sm:$0xff] }
 0x11a   :  { %v218_v62 = vadd.s32 %v217_v61, %v213_v60  ;;  %725 = vmatprep.subr.bf16.mxu0 %v724_v55  ;;  %v728_v60 = vpack.c.bf16 %v518_v59, %v517_v58  ;;  %v501_v61 = vld [vmem:[#allocation5 + $0x50] sm:$0xff] }
 0x11c   :  { %v219_v63 = vadd.s32 536870912, %v218_v62 }
 0x11e   :  { %v220_v0 = vshrl.u32 %v219_v63, 30 }
 0x120   :  { %v221_v1 = vshll.u32 %v220_v0, 30  ;;  %v244_v22 = vsub.s32 4, %v220_v0 }
 0x122   :  { %v222_v2 = vsub.s32 %v218_v62, %v221_v1  ;;  %v245_v25 = vsel %vm160_vm10, %v244_v22, %v220_v0  ;;  %v502_v62 = vld [vmem:[#allocation5 + $0x58] sm:$0xff]  ;;  %v519_v0 = vld [vmem:[#allocation5 + $0xe0] sm:$0xff]  ;;  %v520_v1 = vld [vmem:[#allocation5 + $0xe8] sm:$0xff] }
 0x123   :  { %v247_v28 = vsel %vm159_vm11, 0, %v245_v25  ;;  %v730_v63 = vpack.c.bf16 %v502_v62, %v501_v61 }
 0x124   :  { %v224_v3 = vsub.s32 0, %v222_v2  ;;  %v251_v30 = vadd.s32 3, %v247_v28  ;;  %v355_v33 = vand.u32 3, %v247_v28 }
 0x126   :  { %v626_v4 = vmin.u32 %v224_v3, %v222_v2  ;;  %v252_v32 = vand.u32 3, %v251_v30  ;;  %vm360_vm14 = vcmp.eq.s32.totalorder %v355_v33, 2  ;;  %vm357_vm0 = vcmp.eq.s32.totalorder %v355_v33, 0  ;;  %v503_v3 = vld [vmem:[#allocation5 + $0x60] sm:$0xff] }
 0x127   :  { %vm356_vm2 = vcmp.lt.s32.totalorder %v355_v33, 2 }
 0x128   :  { %v226_v5 = vclz %v626_v4  ;;  %vm257_vm13 = vcmp.eq.s32.totalorder %v252_v32, 2  ;;  %vm254_vm15 = vcmp.eq.s32.totalorder %v252_v32, 0  ;;  %vm253_vm1 = vcmp.lt.s32.totalorder %v252_v32, 2  ;;  %v504_v4 = vld [vmem:[#allocation5 + $0x68] sm:$0xff] }
 0x12a   :  { %v627_v6 = vadd.s32 4294967294, %v226_v5  ;;  %v734_v5 = vpack.c.bf16 %v504_v4, %v503_v3 }
 0x12c   :  { %vm628_vm9 = vcmp.lt.s32.totalorder %v627_v6, 0 }
 0x12d   :  { %v229_v8 = vsel %vm628_vm9, 0, %v627_v6  ;;  %v521_v6 = vld [vmem:[#allocation5 + $0xf0] sm:$0xff] }
 0x12e   :  { %v230_v10 = vsub.s32 32, %v229_v8  ;;  %v234_v11 = vsub.s32 4294967266, %v229_v8  ;;  %v231_v12 = vshll.u32 %v222_v2, %v229_v8  ;;  %v732_v2 = vpack.c.bf16 %v520_v1, %v519_v0  ;;  %v522_v8 = vld [vmem:[#allocation5 + $0xf8] sm:$0xff] }
 0x130   :  { %v232_v14 = vshrl.u32 %v214_v9, %v230_v10  ;;  %v235_v15 = vadd.s32 127, %v234_v11  ;;  %v736_v9 = vpack.c.bf16 %v522_v8, %v521_v6  ;;  %v505_v10 = vld [vmem:[#allocation5 + $0x70] sm:$0xff]  ;;  %v506_v11 = vld [vmem:[#allocation5 + $0x78] sm:$0xff] }
 0x132   :  { %v233_v16 = vor.u32 %v232_v14, %v231_v12  ;;  %v236_v17 = vshll.u32 %v235_v15, 23  ;;  %v738_v12 = vpack.c.bf16 %v506_v11, %v505_v10  ;;  %v401_v14 = vshrl.u32 %v143_v27, 7 }
 0x134   :  { %v237_v18 = vor.u32 4788187, %v236_v17  ;;  %v240_v20 = vcvt.s32.f32 %v233_v16  ;;  %v402_v15 = vsub.s32 0, %v401_v14  ;;  %v398_v16 = vld [vmem:[%s980_s4] sm:$0x3]  ;;  %v406_v17 = vsub.s32 1, %v401_v14 }
 0x136   :  { %v238_v19 = vand.u32 2147483647, %v237_v18  ;;  %v403_v18 = vrot.slane %v398_v16, %v402_v15 }
 0x138   :  { %v241_v21 = vmul.f32 %v240_v20, %v238_v19  ;;  %v407_v19 = vrot.slane %v398_v16, %v406_v17 }
 0x13a   :  { %v242_v23 = vxor.u32 2147483648, %v241_v21 }
 0x13c   :  { %v243_v24 = vsel %vm160_vm10, %v242_v23, %v241_v21 }
 0x13d   :  { %v246_v26 = vsel %vm159_vm11, %v929_v7, %v243_v24  ;;  %v499_v7 = vld [vmem:[#allocation5 + $0x40] sm:$0xff] }
 0x13e   :  { %759 = vcosq.f32 %v246_v26  ;;  %v726_v57 = vpack.c.bf16 %v500_v56, %v499_v7 }
 0x13f   :  { %761 = vsinq.f32 %v246_v26 }
 0x140   :  { %727 = vmatpush3.bf16.msra.mxu0 %v726_v57 }
 0x141   :  { %729 = vmatprep.subr.bf16.mxu0 %v728_v60 }
 0x144   :  { %731 = vmatpush3.bf16.msra.mxu0 %v730_v63 }
 0x145   :  { %733 = vmatprep.subr.bf16.mxu0 %v732_v2 }
 0x148   :  { %v760_v34 = vpop.eup %759  ;;  %735 = vmatpush3.bf16.msra.mxu0 %v734_v5 }
 0x149   :  { %v762_v35 = vpop.eup %761  ;;  %v258_v36 = vxor.u32 2147483648, %v760_v34  ;;  %737 = vmatprep.subr.bf16.mxu0 %v736_v9 }
 0x14a   :  { %v255_v13 = vxor.u32 2147483648, %v762_v35 }
 0x14b   :  { %v259_v38 = vsel %vm257_vm13, %v258_v36, %v762_v35  ;;  %v362_v39 = vsel %vm360_vm14, %v258_v36, %v762_v35  ;;  %v633_v35 = vld [vmem:[%s982_s6] ss:$0 sm:$0xff] }
 0x14c   :  { %v256_v40 = vsel %vm254_vm15, %v760_v34, %v255_v13  ;;  %v359_v41 = vsel %vm357_vm0, %v760_v34, %v255_v13  ;;  %739 = vmatpush3.bf16.msra.mxu0 %v738_v12 }
 0x14d   :  { %v260_v42 = vsel %vm253_vm1, %v256_v40, %v259_v38  ;;  %v363_v43 = vsel %vm356_vm2, %v359_v41, %v362_v39 }
 0x14e   :  { %v261_v44 = vsel %vm250_vm3, nan, %v260_v42  ;;  %v364_v45 = vsel %vm250_vm3, nan, %v363_v43 }
 0x14f   :  { %v365_v46 = vsel %vm950_vm12, %v261_v44, %v364_v45 }
 0x150   :  { %475 = vmatmul.mubr.f32.vlgmr.msra.gmra.mrb[0].mxu1 %v365_v46 }
 0x223   :  { %v476_v20 = vpop.f32.mrb[0].mxu1 }
 0x224   :  { %v477_v21 = vadd.f32 %v476_v20, %v403_v18  ;;  %v478_v22 = vpop.f32.mrb[1].mxu1 }
 0x225   :  { %v479_v23 = vadd.f32 %v478_v22, %v407_v19 }
 0x226   :  { %v483_v24 = vmul.f32 0.70710677, %v477_v21  ;;  %v481_v31 = vmul.f32 0.5, %v477_v21 }
 0x227   :  { %v484_v25 = vmul.f32 0.70710677, %v479_v23  ;;  %v482_v27 = vmul.f32 0.5, %v479_v23 }
 0x228   :  { %763 = verf.f32 %v483_v24 }
 0x229   :  { %765 = verf.f32 %v484_v25 }
 0x232   :  { %v764_v26 = vpop.eup %763 }
 0x233   :  { %v766_v28 = vpop.eup %765  ;;  %v487_v29 = vadd.f32 1.0, %v764_v26 }
 0x234   :  { %v488_v30 = vadd.f32 1.0, %v766_v28 }
 0x235   :  { %v489_v33 = vmul.f32 %v487_v29, %v481_v31 }
 0x236   :  { %v490_v32 = vmul.f32 %v488_v30, %v482_v27 }
 0x238   :  { %594 = vmatprep.mubr.f32.mxu0 %v490_v32 }
 0x239   :  { %595 = vmatmul.mubr.f32.vlgmr.msra.gmra.mrb[2].mxu0 %v489_v33 }
 0x30c   :  { %v668_v34 = vpop.f32.mrb[2].mxu0 }
 0x30d   :  { %v669_v36 = vpop.f32.mrb[3].mxu0 }
 0x30e   :  { %v670_v37 = vadd.f32 %v669_v36, %v668_v34 }
 0x310   :  { %v597_v13 = vadd.f32 %v670_v37, %v633_v35 }
 0x312   :  { %v601_v38 = vmul.f32 0.70710677, %v597_v13  ;;  %v600_v40 = vmul.f32 0.5, %v597_v13 }
 0x314   :  { %767 = verf.f32 %v601_v38 }
 0x31e   :  { %v768_v39 = vpop.eup %767 }
 0x31f   :  { %v603_v41 = vadd.f32 1.0, %v768_v39 }
 0x321   :  { %v604_v42 = vmul.f32 %v603_v41, %v600_v40 }
 0x323   :  { %605 = vst [vmem:[#allocation7] sm:$0xff] %v604_v42 }
 0x324   :  { %824 = shalt.err (!%p821_p6)
}
 0x325   :  { %s825_s14 = scalar_lea.hbm %s983_s7, 128 }
 0x326   :  { %p826_p7 = scmp.ne.s32.totalorder %s983_s7, %s825_s14  ;;  %p829_p8 = scmp.lt.u32.totalorder %s825_s14, %s983_s7 }
 0x328   :  { %p831_p9 = pnand %p829_p8, %p826_p7 }
 0x32a   :  { %834 = shalt.err (!%p831_p9)
}
 0x32b   :  { %615 = dma.vmem_to_hbm [thread:$0]  %s613_s11, 128, %s983_s7, [#allocation4]  }
 0x32c   :  { %839 = dma.done.wait [#allocation4], 128  }
 0x32d   :  { %840 = vsyncadd [#allocation4], 4294967168 }
 0x32e   :  { %619 = vsyncpa [#allocation3], 1 }
 0x32f   :  { %620 = vsyncpa [#allocation6], 1 }
 0x330   :  { %621 = vsyncpa [#allocation4], 1 }

</bundles_post_ra>
